<compile_context>
chip_gen: v7x
topology: tpu7x:2x2x1
jax: 0.10.0
libtpu: 0.0.40
codegen_flags: <defaults>
</compile_context>

<pallas_src>
import functools

import jax
import jax.numpy as jnp
from jax import lax
from jax.experimental import pallas as pl
from jax.experimental.pallas import tpu as pltpu


def _round_up(x, m):
    return ((x + m - 1) // m) * m


def _instance_norm_kernel(x_ref, scale_ref, shift_ref, o_ref, *,
                          eps, hw, rows_per_block, needs_mask, single_block):
    # x_ref:     (rows_per_block, HW_pad)  one row == one (n, c) instance
    # scale_ref: (NC_pad, 1)               whole array, VMEM-resident across steps
    # shift_ref: (NC_pad, 1)
    if single_block:
        scale = scale_ref[...]
        shift = shift_ref[...]
    else:
        start = pl.multiple_of(pl.program_id(0) * rows_per_block, rows_per_block)
        scale = scale_ref[pl.ds(start, rows_per_block), :]
        shift = shift_ref[pl.ds(start, rows_per_block), :]

    x = x_ref[...].astype(jnp.float32)          # (rows, HW_pad)
    inv_n = jnp.float32(1.0 / hw)

    if needs_mask:
        lane = lax.broadcasted_iota(jnp.int32, x.shape, 1)
        valid = lane < hw
        xz = jnp.where(valid, x, 0.0)
    else:
        xz = x

    mean = jnp.sum(xz, axis=-1, keepdims=True) * inv_n
    centered = xz - mean
    if needs_mask:
        centered = jnp.where(valid, centered, 0.0)
    # population variance (torch.var unbiased * (n-1)/n == divide-by-n variance)
    var = jnp.sum(centered * centered, axis=-1, keepdims=True) * inv_n

    inv_std = lax.rsqrt(var + eps)              # per-row, lands on EUP slot
    a = inv_std * scale                         # (rows, 1)
    b = shift - mean * a                        # (rows, 1)
    o_ref[...] = (x * a + b).astype(o_ref.dtype)


def _choose_rows_per_block(nc, hw_pad, target_bytes=2 << 20):
    """Largest row-block (multiple of 8) targeting ~2 MiB per x block."""
    if nc <= 8:
        return nc                                # tiny: single full-extent block
    rows = max(8, target_bytes // (hw_pad * 4))  # ~2 MiB of f32 per block
    rows = min(rows, nc)
    if nc >= 16:
        rows = min(rows, nc // 2)                # >=2 grid steps for v7x's 2 TCs
    return max(8, (rows // 8) * 8)


def instance_normalization(x, scale, shift, eps=1e-9):
    """x: (N, C, H, W) float; scale, shift: (C,) float."""
    N, C, H, W = x.shape
    HW = H * W
    NC = N * C

    HW_pad = _round_up(HW, 128)                  # lane-dense loads/stores
    needs_mask = HW_pad != HW

    rows_per_block = _choose_rows_per_block(NC, HW_pad)
    NC_pad = _round_up(NC, rows_per_block)
    grid = (NC_pad // rows_per_block,)

    x2 = x.reshape(NC, HW)
    # Per-row params: repeat channel params for every batch element (row = n*C + c).
    scale2 = jnp.tile(scale.astype(jnp.float32), (N,)).reshape(NC, 1)
    shift2 = jnp.tile(shift.astype(jnp.float32), (N,)).reshape(NC, 1)

    if needs_mask:
        x2 = jnp.pad(x2, ((0, 0), (0, HW_pad - HW)))
    if NC_pad != NC:
        pad_rows = NC_pad - NC
        x2 = jnp.pad(x2, ((0, pad_rows), (0, 0)))
        scale2 = jnp.pad(scale2, ((0, pad_rows), (0, 0)))
        shift2 = jnp.pad(shift2, ((0, pad_rows), (0, 0)))

    # VMEM budget: double-buffered x + out blocks, resident (lane-padded) params,
    # plus headroom for full-block f32 temporaries. Kept well under v7x's 64 MiB.
    # TODO(synk): for very large H*W (>=512*512) add a second "arbitrary" grid axis
    # over HW with sum/sumsq accumulators instead of one monolithic lane block.
    block_bytes = rows_per_block * HW_pad * 4
    param_bytes = 4 * NC_pad * 128 * 4
    vmem_limit = int(min(max(8 * block_bytes + param_bytes + (4 << 20), 32 << 20),
                         56 << 20))

    kernel = functools.partial(
        _instance_norm_kernel,
        eps=float(eps),
        hw=HW,
        rows_per_block=rows_per_block,
        needs_mask=needs_mask,
        single_block=(grid[0] == 1),
    )

    out2 = pl.pallas_call(
        kernel,
        out_shape=jax.ShapeDtypeStruct((NC_pad, HW_pad), x.dtype),
        grid_spec=pltpu.PrefetchScalarGridSpec(
            num_scalar_prefetch=0,
            grid=grid,
            in_specs=[
                pl.BlockSpec((rows_per_block, HW_pad), lambda i: (i, 0)),
                # Whole-array params with constant block index: DMA'd once,
                # resident in VMEM across all grid steps (no per-step tiny DMAs).
                pl.BlockSpec((NC_pad, 1), lambda i: (0, 0)),
                pl.BlockSpec((NC_pad, 1), lambda i: (0, 0)),
            ],
            out_specs=pl.BlockSpec((rows_per_block, HW_pad), lambda i: (i, 0)),
        ),
        compiler_params=pltpu.CompilerParams(
            dimension_semantics=("parallel",),
            vmem_limit_bytes=vmem_limit,
        ),
    )(x2, scale2, shift2)

    out2 = out2[:NC, :HW]
    return out2.reshape(N, C, H, W)


def _reference_instance_norm(x, scale, shift, eps=1e-9):
    N, C, H, W = x.shape
    t = x.reshape(N, C, H * W)
    mean = jnp.mean(t, axis=2, keepdims=True)
    var = jnp.mean((t - mean) ** 2, axis=2, keepdims=True)
    out = (t - mean) / jnp.sqrt(var + eps)
    out = out * scale[None, :, None] + shift[None, :, None]
    return out.reshape(N, C, H, W)


if __name__ == "__main__":
    key = jax.random.PRNGKey(0)
    k_x, k_scale = jax.random.split(key)

    N, C, H, W = 2, 4, 16, 16
    x = jax.random.normal(k_x, (N, C, H, W), dtype=jnp.float32)

    # Deterministic parameter init mirroring the PyTorch module's __init__:
    scale = jax.random.uniform(k_scale, (C,), dtype=jnp.float32)  # uniform_()
    shift = jnp.zeros((C,), dtype=jnp.float32)                    # zero_()

    out = instance_normalization(x, scale, shift, eps=1e-9)
    out = jax.block_until_ready(out)

    ref = _reference_instance_norm(x, scale, shift, eps=1e-9)
    assert out.shape == (N, C, H, W)
    assert jnp.allclose(out, ref, atol=1e-5, rtol=1e-5)

    print("KERNEL_OK")
</pallas_src>

<mosaic_0001>
module attributes {stable_mosaic.version = 11 : i64} {
  func.func @_instance_norm_kernel(%arg0: i32, %arg1: memref<8x256xf32, #tpu.memory_space<vmem>>, %arg2: memref<8x1xf32, #tpu.memory_space<vmem>>, %arg3: memref<8x1xf32, #tpu.memory_space<vmem>>, %arg4: memref<8x256xf32, #tpu.memory_space<vmem>>) attributes {dimension_semantics = [#tpu.dimension_semantics<parallel>], iteration_bounds = array<i64: 1>, scalar_prefetch = 0 : i64, scratch_operands = 0 : i64, tpu.core_type = #tpu.core_type<tc>, window_params = [{transform_indices = @transform_0, window_bounds = array<i64: 8, 256>}, {pipeline_mode = #tpu.pipeline_mode<synchronous>, transform_indices = @transform_1, window_bounds = array<i64: 8, 1>}, {pipeline_mode = #tpu.pipeline_mode<synchronous>, transform_indices = @transform_2, window_bounds = array<i64: 8, 1>}, {transform_indices = @transform_3, window_bounds = array<i64: 8, 256>}]} {
    %c0 = arith.constant 0 : index
    %c0_0 = arith.constant 0 : index
    %0 = vector.load %arg2[%c0, %c0_0] : memref<8x1xf32, #tpu.memory_space<vmem>>, vector<8x1xf32>
    %c0_1 = arith.constant 0 : index
    %c0_2 = arith.constant 0 : index
    %1 = vector.load %arg3[%c0_1, %c0_2] : memref<8x1xf32, #tpu.memory_space<vmem>>, vector<8x1xf32>
    %c0_3 = arith.constant 0 : index
    %c0_4 = arith.constant 0 : index
    %2 = vector.load %arg1[%c0_3, %c0_4] : memref<8x256xf32, #tpu.memory_space<vmem>>, vector<8x256xf32>
    %cst = arith.constant dense<0.000000e+00> : vector<8xf32>
    %3 = vector.multi_reduction <add>, %2, %cst [1] : vector<8x256xf32> to vector<8xf32>
    %4 = vector.shape_cast %3 : vector<8xf32> to vector<8x1xf32>
    %cst_5 = arith.constant 3.906250e-03 : f32
    %5 = vector.broadcast %cst_5 : f32 to vector<8x1xf32>
    %6 = arith.mulf %4, %5 : vector<8x1xf32>
    %7 = vector.broadcast %6 : vector<8x1xf32> to vector<8x256xf32>
    %8 = arith.subf %2, %7 : vector<8x256xf32>
    %9 = arith.mulf %8, %8 : vector<8x256xf32>
    %cst_6 = arith.constant dense<0.000000e+00> : vector<8xf32>
    %10 = vector.multi_reduction <add>, %9, %cst_6 [1] : vector<8x256xf32> to vector<8xf32>
    %11 = vector.shape_cast %10 : vector<8xf32> to vector<8x1xf32>
    %cst_7 = arith.constant 3.906250e-03 : f32
    %12 = vector.broadcast %cst_7 : f32 to vector<8x1xf32>
    %13 = arith.mulf %11, %12 : vector<8x1xf32>
    %cst_8 = arith.constant 9.99999971E-10 : f32
    %14 = vector.broadcast %cst_8 : f32 to vector<8x1xf32>
    %15 = arith.addf %13, %14 : vector<8x1xf32>
    %16 = math.rsqrt %15 : vector<8x1xf32>
    %17 = arith.mulf %16, %0 : vector<8x1xf32>
    %18 = arith.mulf %6, %17 : vector<8x1xf32>
    %19 = arith.subf %1, %18 : vector<8x1xf32>
    %20 = vector.broadcast %17 : vector<8x1xf32> to vector<8x256xf32>
    %21 = arith.mulf %2, %20 : vector<8x256xf32>
    %22 = vector.broadcast %19 : vector<8x1xf32> to vector<8x256xf32>
    %23 = arith.addf %21, %22 : vector<8x256xf32>
    %c0_9 = arith.constant 0 : index
    %c0_10 = arith.constant 0 : index
    %24 = vector.load %arg4[%c0_9, %c0_10] : memref<8x256xf32, #tpu.memory_space<vmem>>, vector<8x256xf32>
    tpu.vector_store %arg4[%c0_9, %c0_10], %23 {strides = array<i32>} : memref<8x256xf32, #tpu.memory_space<vmem>>, vector<8x256xf32>,
    return
  }
  func.func @transform_0(%arg0: i32) -> (i32, i32) {
    %c0_i32 = arith.constant 0 : i32
    %c0_i32_0 = arith.constant 0 : i32
    return %arg0, %c0_i32 : i32, i32
  }
  func.func @transform_1(%arg0: i32) -> (i32, i32) {
    %c0_i32 = arith.constant 0 : i32
    %c0_i32_0 = arith.constant 0 : i32
    %c0_i32_1 = arith.constant 0 : i32
    return %c0_i32, %c0_i32_0 : i32, i32
  }
  func.func @transform_2(%arg0: i32) -> (i32, i32) {
    %c0_i32 = arith.constant 0 : i32
    %c0_i32_0 = arith.constant 0 : i32
    %c0_i32_1 = arith.constant 0 : i32
    return %c0_i32, %c0_i32_0 : i32, i32
  }
  func.func @transform_3(%arg0: i32) -> (i32, i32) {
    %c0_i32 = arith.constant 0 : i32
    %c0_i32_0 = arith.constant 0 : i32
    return %arg0, %c0_i32 : i32, i32
  }
}

</mosaic_0001>

<bundles_post_ra>
// kernel: tpu_custom_call.1
= control target key start
LH: loop header
LB: loop body
LE: loop exit
PB: predicated region body
PF: predicated region fallthrough
CT: control target
= control target key end

     0   :  { %s142_s0 = inlined_call_operand.vmem [shape: f32[8,256], index: 0, kind: input, shape index: {}]   ;;  %s143_s1 = inlined_call_operand.vmem [shape: f32[8,1], index: 1, kind: input, shape index: {}]   ;;  %s144_s2 = inlined_call_operand.vmem [shape: f32[8,1], index: 2, kind: input, shape index: {}]   ;;  %s145_s3 = inlined_call_operand.hbm [shape: f32[8,256], index: 3, kind: output, shape index: {}]  }
   0x1   :  { %v17_v0 = vld [vmem:[%s142_s0] sm:$0xff]  ;;  %v18_v1 = vld [vmem:[%s142_s0 + $0x8] sm:$0xff] }
   0x2   :  { %8 = vsyncpa [#allocation3], 0  ;;  %v19_v2 = vadd.f32 %v18_v1, %v17_v0  ;;  %v96_v10 = vmov 0   ;;  %v15_v14 = vld [vmem:[%s143_s1] sm:$0xff]  ;;  %s97_s19 = smov [#allocation2]  }
   0x3   :  { %68 = vset.pattern.permute.xlu1 %v96_v10  ;;  %69 = vset.pattern.permute.xlu0 %v96_v10  ;;  %v16_v17 = vld [vmem:[%s144_s2] sm:$0xff]  ;;  %s58_s20 = sshll.u32 %s97_s19, 4  ;;  %s59_s20 = int_to_ptr.vmem [resolvable:$true] %s58_s20 }
   0x4   :  { %20 = vadd.xlane.f32.xlu0 %v19_v2  ;;  %s72_s1 = scalar_lea.vmem %s59_s20, 256  ;;  %p77_p1 = scmp.lt.s32.totalorder %s59_s20, %s59_s20 }
   0x5   :  { %p73_p0 = scmp.ne.s32.totalorder %s59_s20, %s72_s1  ;;  %p78_p2 = scmp.lt.s32.totalorder %s72_s1, %s72_s1 }
   0x7   :  { %p79_p3 = por %p78_p2, %p77_p1 }
   0x9   :  { %p80_p4 = pnand %p79_p3, %p73_p0 }
  0x91   :  { %v21_v3 = vpop.xlane.xlu0 %20 }
  0x92   :  { %v22_v4 = vmul.f32 0.00390625, %v21_v3 }
  0x94   :  { %v23_v5 = vsub.f32 %v17_v0, %v22_v4  ;;  %v24_v6 = vsub.f32 %v18_v1, %v22_v4 }
  0x96   :  { %v25_v7 = vmul.f32 %v23_v5, %v23_v5  ;;  %v26_v8 = vmul.f32 %v24_v6, %v24_v6 }
  0x98   :  { %v27_v9 = vadd.f32 %v26_v8, %v25_v7 }
  0x9a   :  { %28 = vadd.xlane.f32.xlu0 %v27_v9 }
 0x127   :  { %v29_v11 = vpop.xlane.xlu0 %28 }
 0x128   :  { %v30_v12 = vmul.f32 0.00390625, %v29_v11 }
 0x12a   :  { %v31_v13 = vadd.f32 1e-09, %v30_v12 }
 0x12c   :  { %70 = vrsqrt.f32 %v31_v13 }
 0x136   :  { %v71_v15 = vpop.eup %70 }
 0x137   :  { %v33_v16 = vmul.f32 %v71_v15, %v15_v14 }
 0x139   :  { %38 = vperm.xlu1 %68, %v33_v16   ;;  %v34_v18 = vmul.f32 %v33_v16, %v22_v4 }
 0x13b   :  { %v35_v19 = vsub.f32 %v16_v17, %v34_v18 }
 0x13d   :  { %45 = vperm.xlu1 %68, %v35_v19  }
 0x1b8   :  { %v39_v20 = vpop.permute.xlu1 %38 }
 0x1b9   :  { %v41_v21 = vmul.f32 %v39_v20, %v17_v0  ;;  %v42_v22 = vmul.f32 %v39_v20, %v18_v1 }
 0x1bc   :  { %v46_v23 = vpop.permute.xlu1 %45 }
 0x1bd   :  { %v48_v24 = vadd.f32 %v46_v23, %v41_v21  ;;  %v49_v25 = vadd.f32 %v46_v23, %v42_v22 }
 0x1bf   :  { %50 = vst [vmem:[#allocation2] sm:$0xff] %v48_v24  ;;  %51 = vst [vmem:[#allocation2 + $0x8] sm:$0xff] %v49_v25 }
 0x1c0   :  { %83 = shalt.err (!%p80_p4)
}
 0x1c1   :  { %s84_s22 = scalar_lea.hbm %s145_s3, 256 }
 0x1c2   :  { %p85_p5 = scmp.ne.s32.totalorder %s145_s3, %s84_s22  ;;  %p88_p6 = scmp.lt.u32.totalorder %s84_s22, %s145_s3 }
 0x1c4   :  { %p90_p7 = pnand %p88_p6, %p85_p5 }
 0x1c6   :  { %93 = shalt.err (!%p90_p7)
}
 0x1c7   :  { %61 = dma.vmem_to_hbm [thread:$0]  %s59_s20, 256, %s145_s3, [#allocation3]  }
 0x1c8   :  { %94 = dma.done.wait [#allocation3], 256  }
 0x1c9   :  { %95 = vsyncadd [#allocation3], 4294967040 }
 0x1ca   :  { %65 = vsyncpa [#allocation3], 1 }

</bundles_post_ra>
